<compile_context>
chip_gen: v7x
topology: tpu7x:2x2x1
jax: 0.10.0
libtpu: 0.0.40
codegen_flags: <defaults>
</compile_context>

<pallas_src>
import functools

import jax
import jax.numpy as jnp
from jax.experimental import pallas as pl
from jax.experimental.pallas import tpu as pltpu

F_IN = 54   # 2 * 27 flattened trigram context
H1 = 64
H2 = 32
F_OUT = 27


def _round_up(n, m):
    return (n + m - 1) // m * m


def mlp_kernel(x_ref, w1_ref, b1_ref, w2_ref, b2_ref, w3_ref, b3_ref, o_ref):
    # In-kernel f32 -> bf16 cast of the streamed input (hidden under DMA).
    x = x_ref[...].astype(jnp.bfloat16)

    # fc1 + tanh: bf16 MXU operands, f32 accumulation / bias / activation.
    h1 = jnp.tanh(
        jnp.dot(x, w1_ref[...], preferred_element_type=jnp.float32)
        + b1_ref[...]
    )
    # fc2 + tanh
    h2 = jnp.tanh(
        jnp.dot(h1.astype(jnp.bfloat16), w2_ref[...],
                preferred_element_type=jnp.float32)
        + b2_ref[...]
    )
    # fc3 (no activation). Narrow (TB, 27) f32 store: the lane-masked vst is
    # hidden under the output DMA and writes only the useful bytes.
    o_ref[...] = (
        jnp.dot(h2.astype(jnp.bfloat16), w3_ref[...],
                preferred_element_type=jnp.float32)
        + b3_ref[...]
    ).astype(o_ref.dtype)


def _choose_tile(batch, tb):
    """Batch tile: always a multiple of 8; >=4 grid steps for large batches."""
    tb = max(8, _round_up(tb, 8))           # (8,128)-legal regardless of caller
    if batch <= tb:
        return _round_up(batch, 8)           # single tile covers the batch
    # Keep at least 4 grid steps so the pipeline overlaps prefetch/writeback
    # and v7x can shard batch tiles across its 2 TensorCores.
    quarter = _round_up(pl.cdiv(batch, 4), 8)
    return min(tb, max(8, quarter))


@functools.partial(jax.jit, static_argnames=("tb",))
def fully_connected_nn(x, params, tb=8192):
    """x: (B, 2, 27) or (B, 54) float32. Returns (B, 27) float32."""
    B = x.shape[0]
    x2d = x.reshape(B, -1)  # == x.view(x.size(0), -1)
    assert x2d.shape[1] == F_IN, f"expected {F_IN} flattened features"

    w1, b1, w2, b2, w3, b3 = params  # weights bf16, biases f32

    TB = _choose_tile(B, tb)
    grid = (pl.cdiv(B, TB),)  # ragged final block is masked by Pallas; no pad

    # Weights / biases: constant index_map -> DMA'd once, resident in VMEM.
    const2d = lambda shape: pl.BlockSpec(shape, lambda i: (0, 0))

    out = pl.pallas_call(
        mlp_kernel,
        out_shape=jax.ShapeDtypeStruct((B, F_OUT), jnp.float32),
        grid=grid,
        in_specs=[
            pl.BlockSpec((TB, F_IN), lambda i: (i, 0)),  # x: streamed per tile
            const2d((F_IN, H1)),    # w1
            const2d((1, H1)),       # b1
            const2d((H1, H2)),      # w2
            const2d((1, H2)),       # b2
            const2d((H2, F_OUT)),   # w3
            const2d((1, F_OUT)),    # b3
        ],
        out_specs=pl.BlockSpec((TB, F_OUT), lambda i: (i, 0)),
        compiler_params=pltpu.CompilerParams(
            # Batch tiles are independent -> shard across TCs on v7x.
            dimension_semantics=("parallel",),
            # TB=8192: ~1.7 MiB x + ~0.85 MiB out per tile, double-buffered
            # ~5.1 MiB + ~19 KB weights; 32 MiB leaves ample headroom and
            # stays well under v7x's 64 MiB physical VMEM.
            vmem_limit_bytes=32 * 1024 * 1024,
        ),
    )(x2d, w1, b1, w2, b2, w3, b3)

    return out


def init_params(key):
    """Deterministic init mirroring nn.Linear's U(-1/sqrt(in), 1/sqrt(in)).

    Weights are stored (in_features, out_features) in bf16 (MXU operands);
    biases stay f32 with shape (1, out_features).
    """
    dims = [(F_IN, H1), (H1, H2), (H2, F_OUT)]
    params = []
    for (fan_in, fan_out) in dims:
        key, kw, kb = jax.random.split(key, 3)
        bound = 1.0 / jnp.sqrt(float(fan_in))
        w = jax.random.uniform(kw, (fan_in, fan_out), jnp.float32, -bound, bound)
        b = jax.random.uniform(kb, (1, fan_out), jnp.float32, -bound, bound)
        params += [w.astype(jnp.bfloat16), b]
    return tuple(params)


def reference_forward(x, params):
    """Pure-JAX reference: same bf16 rounding of x / weights, f32 math."""
    w1, b1, w2, b2, w3, b3 = params
    h = x.reshape(x.shape[0], -1).astype(jnp.bfloat16).astype(jnp.float32)
    h = jnp.tanh(h @ w1.astype(jnp.float32) + b1)
    h = jnp.tanh(h @ w2.astype(jnp.float32) + b2)
    return h @ w3.astype(jnp.float32) + b3


if __name__ == "__main__":
    key = jax.random.PRNGKey(0)
    key, kx = jax.random.split(key)

    # Trigram input: batch of 8, two context slots of width 27.
    B = 8
    x = jax.random.normal(kx, (B, 2, 27), dtype=jnp.float32)

    params = init_params(key)

    out = fully_connected_nn(x, params)
    out = jax.block_until_ready(out)

    ref = reference_forward(x, params)
    assert out.shape == (B, F_OUT)
    # bf16 matmul operands -> compare against f32-accumulation reference
    # with loose tolerance.
    assert jnp.allclose(out, ref, atol=2e-2, rtol=2e-2), "mismatch vs reference"

    print("KERNEL_OK")
</pallas_src>

<mosaic_0001>
module attributes {stable_mosaic.version = 11 : i64} {
  func.func @mlp_kernel(%arg0: i32, %arg1: memref<8x54xf32, #tpu.memory_space<vmem>>, %arg2: memref<54x64xbf16, #tpu.memory_space<vmem>>, %arg3: memref<1x64xf32, #tpu.memory_space<vmem>>, %arg4: memref<64x32xbf16, #tpu.memory_space<vmem>>, %arg5: memref<1x32xf32, #tpu.memory_space<vmem>>, %arg6: memref<32x27xbf16, #tpu.memory_space<vmem>>, %arg7: memref<1x27xf32, #tpu.memory_space<vmem>>, %arg8: memref<8x27xf32, #tpu.memory_space<vmem>>) attributes {dimension_semantics = [#tpu.dimension_semantics<parallel>], iteration_bounds = array<i64: 1>, scalar_prefetch = 0 : i64, scratch_operands = 0 : i64, tpu.core_type = #tpu.core_type<tc>, window_params = [{transform_indices = @transform_0, window_bounds = array<i64: 8, 54>}, {pipeline_mode = #tpu.pipeline_mode<synchronous>, transform_indices = @transform_1, window_bounds = array<i64: 54, 64>}, {pipeline_mode = #tpu.pipeline_mode<synchronous>, transform_indices = @transform_2, window_bounds = array<i64: 1, 64>}, {pipeline_mode = #tpu.pipeline_mode<synchronous>, transform_indices = @transform_3, window_bounds = array<i64: 64, 32>}, {pipeline_mode = #tpu.pipeline_mode<synchronous>, transform_indices = @transform_4, window_bounds = array<i64: 1, 32>}, {pipeline_mode = #tpu.pipeline_mode<synchronous>, transform_indices = @transform_5, window_bounds = array<i64: 32, 27>}, {pipeline_mode = #tpu.pipeline_mode<synchronous>, transform_indices = @transform_6, window_bounds = array<i64: 1, 27>}, {transform_indices = @transform_7, window_bounds = array<i64: 8, 27>}]} {
    %c0 = arith.constant 0 : index
    %c0_0 = arith.constant 0 : index
    %0 = vector.load %arg1[%c0, %c0_0] : memref<8x54xf32, #tpu.memory_space<vmem>>, vector<8x54xf32>
    %1 = arith.truncf %0 : vector<8x54xf32> to vector<8x54xbf16>
    %c0_1 = arith.constant 0 : index
    %c0_2 = arith.constant 0 : index
    %2 = vector.load %arg2[%c0_1, %c0_2] : memref<54x64xbf16, #tpu.memory_space<vmem>>, vector<54x64xbf16>
    %cst = arith.constant dense<0.000000e+00> : vector<8x64xf32>
    %3 = tpu.matmul %1, %2, %cst {dimension_numbers = #tpu.dot_dimension_numbers<[1], [0], [0], [1], [0, 0, 1, 1], [], []>} : vector<8x54xbf16>, vector<54x64xbf16>, vector<8x64xf32> -> vector<8x64xf32>
    %c0_3 = arith.constant 0 : index
    %c0_4 = arith.constant 0 : index
    %4 = vector.load %arg3[%c0_3, %c0_4] : memref<1x64xf32, #tpu.memory_space<vmem>>, vector<1x64xf32>
    %5 = vector.broadcast %4 : vector<1x64xf32> to vector<8x64xf32>
    %6 = arith.addf %3, %5 : vector<8x64xf32>
    %7 = math.tanh %6 : vector<8x64xf32>
    %8 = arith.truncf %7 : vector<8x64xf32> to vector<8x64xbf16>
    %c0_5 = arith.constant 0 : index
    %c0_6 = arith.constant 0 : index
    %9 = vector.load %arg4[%c0_5, %c0_6] : memref<64x32xbf16, #tpu.memory_space<vmem>>, vector<64x32xbf16>
    %cst_7 = arith.constant dense<0.000000e+00> : vector<8x32xf32>
    %10 = tpu.matmul %8, %9, %cst_7 {dimension_numbers = #tpu.dot_dimension_numbers<[1], [0], [0], [1], [0, 0, 1, 1], [], []>} : vector<8x64xbf16>, vector<64x32xbf16>, vector<8x32xf32> -> vector<8x32xf32>
    %c0_8 = arith.constant 0 : index
    %c0_9 = arith.constant 0 : index
    %11 = vector.load %arg5[%c0_8, %c0_9] : memref<1x32xf32, #tpu.memory_space<vmem>>, vector<1x32xf32>
    %12 = vector.broadcast %11 : vector<1x32xf32> to vector<8x32xf32>
    %13 = arith.addf %10, %12 : vector<8x32xf32>
    %14 = math.tanh %13 : vector<8x32xf32>
    %15 = arith.truncf %14 : vector<8x32xf32> to vector<8x32xbf16>
    %c0_10 = arith.constant 0 : index
    %c0_11 = arith.constant 0 : index
    %16 = vector.load %arg6[%c0_10, %c0_11] : memref<32x27xbf16, #tpu.memory_space<vmem>>, vector<32x27xbf16>
    %cst_12 = arith.constant dense<0.000000e+00> : vector<8x27xf32>
    %17 = tpu.matmul %15, %16, %cst_12 {dimension_numbers = #tpu.dot_dimension_numbers<[1], [0], [0], [1], [0, 0, 1, 1], [], []>} : vector<8x32xbf16>, vector<32x27xbf16>, vector<8x27xf32> -> vector<8x27xf32>
    %c0_13 = arith.constant 0 : index
    %c0_14 = arith.constant 0 : index
    %18 = vector.load %arg7[%c0_13, %c0_14] : memref<1x27xf32, #tpu.memory_space<vmem>>, vector<1x27xf32>
    %19 = vector.broadcast %18 : vector<1x27xf32> to vector<8x27xf32>
    %20 = arith.addf %17, %19 : vector<8x27xf32>
    %c0_15 = arith.constant 0 : index
    %c0_16 = arith.constant 0 : index
    %21 = vector.load %arg8[%c0_15, %c0_16] : memref<8x27xf32, #tpu.memory_space<vmem>>, vector<8x27xf32>
    tpu.vector_store %arg8[%c0_15, %c0_16], %20 {strides = array<i32>} : memref<8x27xf32, #tpu.memory_space<vmem>>, vector<8x27xf32>,
    return
  }
  func.func @transform_0(%arg0: i32) -> (i32, i32) {
    %c0_i32 = arith.constant 0 : i32
    %c0_i32_0 = arith.constant 0 : i32
    return %arg0, %c0_i32 : i32, i32
  }
  func.func @transform_1(%arg0: i32) -> (i32, i32) {
    %c0_i32 = arith.constant 0 : i32
    %c0_i32_0 = arith.constant 0 : i32
    %c0_i32_1 = arith.constant 0 : i32
    return %c0_i32, %c0_i32_0 : i32, i32
  }
  func.func @transform_2(%arg0: i32) -> (i32, i32) {
    %c0_i32 = arith.constant 0 : i32
    %c0_i32_0 = arith.constant 0 : i32
    %c0_i32_1 = arith.constant 0 : i32
    return %c0_i32, %c0_i32_0 : i32, i32
  }
  func.func @transform_3(%arg0: i32) -> (i32, i32) {
    %c0_i32 = arith.constant 0 : i32
    %c0_i32_0 = arith.constant 0 : i32
    %c0_i32_1 = arith.constant 0 : i32
    return %c0_i32, %c0_i32_0 : i32, i32
  }
  func.func @transform_4(%arg0: i32) -> (i32, i32) {
    %c0_i32 = arith.constant 0 : i32
    %c0_i32_0 = arith.constant 0 : i32
    %c0_i32_1 = arith.constant 0 : i32
    return %c0_i32, %c0_i32_0 : i32, i32
  }
  func.func @transform_5(%arg0: i32) -> (i32, i32) {
    %c0_i32 = arith.constant 0 : i32
    %c0_i32_0 = arith.constant 0 : i32
    %c0_i32_1 = arith.constant 0 : i32
    return %c0_i32, %c0_i32_0 : i32, i32
  }
  func.func @transform_6(%arg0: i32) -> (i32, i32) {
    %c0_i32 = arith.constant 0 : i32
    %c0_i32_0 = arith.constant 0 : i32
    %c0_i32_1 = arith.constant 0 : i32
    return %c0_i32, %c0_i32_0 : i32, i32
  }
  func.func @transform_7(%arg0: i32) -> (i32, i32) {
    %c0_i32 = arith.constant 0 : i32
    %c0_i32_0 = arith.constant 0 : i32
    return %arg0, %c0_i32 : i32, i32
  }
}

</mosaic_0001>

<bundles_post_ra>
// kernel: fully_connected_nn.1
= control target key start
LH: loop header
LB: loop body
LE: loop exit
PB: predicated region body
PF: predicated region fallthrough
CT: control target
= control target key end

     0   :  { %v385_v1 = vmov 0.0   ;;  %vm386_vm0 = vmmov 0   ;;  %vm69_vm1 = vcmask 1042432   ;;  %s485_s0 = inlined_call_operand.vmem [shape: f32[8,54], index: 0, kind: input, shape index: {}]   ;;  %s486_s1 = inlined_call_operand.vmem [shape: bf16[54,64], index: 1, kind: input, shape index: {}]   ;;  %s487_s2 = inlined_call_operand.vmem [shape: f32[1,64], index: 2, kind: input, shape index: {}]   ;;  %s488_s3 = inlined_call_operand.vmem [shape: bf16[64,32], index: 3, kind: input, shape index: {}]   ;;  %s489_s4 = inlined_call_operand.vmem [shape: f32[1,32], index: 4, kind: input, shape index: {}]   ;;  %s490_s5 = inlined_call_operand.vmem [shape: bf16[32,27], index: 5, kind: input, shape index: {}]   ;;  %s491_s6 = inlined_call_operand.vmem [shape: f32[1,27], index: 6, kind: input, shape index: {}]   ;;  %s492_s7 = inlined_call_operand.hbm [shape: f32[8,27], index: 7, kind: output, shape index: {}]  }
   0x1   :  { %v347_v0 = vld [vmem:[%s486_s1] sm:$0xff]   ;;  %312 = vmatprep.subr.bf16.mxu0 %v385_v1  ;;  %324 = vmatprep.subr.bf16.mxu1 %v385_v1  ;;  %v348_v2 = vld [vmem:[%s486_s1 + $0x8] sm:$0xff]   ;;  %v349_v3 = vld [vmem:[%s486_s1 + $0x10] sm:$0xff]  }
   0x2   :  { %313 = vmatpush3.bf16.msra.mxu0 %v347_v0  ;;  %320 = vmatprep.mubr.msk.bf16.mxu0 %vm386_vm0, %v385_v1  ;;  %v350_v4 = vld [vmem:[%s486_s1 + $0x18] ss:$0 sps:$4 sm:$0x77]  }
   0x3   :  { %314 = vmatprep.subr.bf16.mxu0 %v385_v1  ;;  %332 = vmatprep.mubr.msk.bf16.mxu1 %vm386_vm0, %v385_v1 }
   0x6   :  { %315 = vmatpush3.bf16.msra.mxu0 %v348_v2 }
   0x7   :  { %316 = vmatprep.subr.bf16.mxu0 %v385_v1 }
   0x8   :  { %12 = vsyncpa [#allocation3], 0  ;;  %v28_v5 = vld [vmem:[%s485_s0] sm:$0xff]  ;;  %v71_v6 = vsel %vm69_vm1, %v350_v4, 0  ;;  %vm65_vm2 = vcmask 441344   ;;  %v352_v9 = vld [vmem:[%s488_s3 + $0x8] sm:$0xff]  }
   0x9   :  { %v29_v7 = vpack.c.bf16 %v28_v5, %v28_v5  ;;  %v351_v8 = vld [vmem:[%s488_s3] sm:$0xff]   ;;  %v353_v10 = vld [vmem:[%s488_s3 + $0x10] sm:$0xff]   ;;  %v354_v11 = vld [vmem:[%s488_s3 + $0x18] sm:$0xff]   ;;  %vm154_vm3 = vcmask 523264   ;;  %vm223_vm4 = vcmask 261120   ;;  %vm267_vm5 = vcmask 220160  }
   0xa   :  { %317 = vmatpush3.bf16.msra.mxu0 %v349_v3  ;;  %325 = vmatpush3.bf16.msra.mxu1 %v351_v8  ;;  %v283_v12 = vld [vmem:[%s487_s2] ss:$0 sm:$0xff]  ;;  %v356_v21 = vld [vmem:[%s490_s5 + $0x8] sm:$0xff]  }
   0xb   :  { %318 = vmatprep.subr.bf16.mxu0 %v385_v1  ;;  %326 = vmatprep.subr.bf16.mxu1 %v385_v1  ;;  %v355_v20 = vld [vmem:[%s490_s5] sm:$0xff]   ;;  %s387_s5 = smov [#allocation2]  }
   0xc   :  { %v289_v22 = vld [vmem:[%s489_s4] ss:$0 sm:$0xff]  ;;  %s275_s25 = sshll.u32 %s387_s5, 4  ;;  %s276_s25 = int_to_ptr.vmem [resolvable:$true] %s275_s25 }
   0xd   :  { %v295_v30 = vld [vmem:[%s491_s6] ss:$0 sm:$0xff]  ;;  %s361_s4 = scalar_lea.vmem %s276_s25, 128  ;;  %p366_p1 = scmp.lt.s32.totalorder %s276_s25, %s276_s25 }
   0xe   :  { %319 = vmatpush3.bf16.msra.mxu0 %v71_v6  ;;  %327 = vmatpush3.bf16.msra.mxu1 %v352_v9  ;;  %p362_p0 = scmp.ne.s32.totalorder %s276_s25, %s361_s4  ;;  %p367_p2 = scmp.lt.s32.totalorder %s361_s4, %s361_s4 }
   0xf   :  { %336 = vmatprep.subr.bf16.mxu0 %v385_v1  ;;  %328 = vmatprep.subr.bf16.mxu1 %v385_v1 }
  0x10   :  { %p368_p3 = por %p367_p2, %p366_p1 }
  0x11   :  { %321 = vmatmul.mubr.msk.bf16.vlgmr.msra.gmra.mrb[0].mxu0 %vm65_vm2, %v29_v7 }
  0x12   :  { %340 = vmatprep.mubr.msk.bf16.mxu0 %vm386_vm0, %v385_v1  ;;  %329 = vmatpush3.bf16.msra.mxu1 %v353_v10  ;;  %p369_p4 = pnand %p368_p3, %p362_p0 }
  0x13   :  { %330 = vmatprep.subr.bf16.mxu1 %v385_v1  ;;  %337 = vmatpush3.bf16.msra.mxu0 %v355_v20 }
  0x14   :  { %338 = vmatprep.subr.bf16.mxu0 %v385_v1 }
  0x16   :  { %331 = vmatpush3.bf16.msra.mxu1 %v354_v11 }
  0x17   :  { %339 = vmatpush3.bf16.msra.mxu0 %v356_v21 }
  0xe4   :  { %v107_v13 = vpop.f32.mrb[0].mxu0 }
  0xe5   :  { %v108_v14 = vadd.f32 %v283_v12, %v107_v13  ;;  %v322_v15 = vpop.f32.mrb[1].mxu0 }
  0xe6   :  { %v110_v16 = vpop.f32.mrb[2].mxu0 }
  0xe7   :  { %357 = vtanh.f32 %v108_v14  ;;  %v323_v17 = vpop.f32.mrb[3].mxu0 }
  0xf1   :  { %v358_v18 = vpop.eup %357 }
  0xf2   :  { %v114_v19 = vpack.c.bf16 %v358_v18, %v358_v18 }
  0xf4   :  { %333 = vmatmul.mubr.msk.bf16.vlgmr.msra.gmra.mrb[0].mxu1 %vm154_vm3, %v114_v19 }
 0x1c7   :  { %v192_v23 = vpop.f32.mrb[0].mxu1 }
 0x1c8   :  { %v193_v24 = vadd.f32 %v289_v22, %v192_v23  ;;  %v334_v25 = vpop.f32.mrb[1].mxu1 }
 0x1c9   :  { %v195_v26 = vpop.f32.mrb[2].mxu1 }
 0x1ca   :  { %359 = vtanh.f32 %v193_v24  ;;  %v335_v27 = vpop.f32.mrb[3].mxu1 }
 0x1d4   :  { %v360_v28 = vpop.eup %359 }
 0x1d5   :  { %v199_v29 = vpack.c.bf16 %v360_v28, %v360_v28 }
 0x1d7   :  { %341 = vmatmul.mubr.msk.bf16.vlgmr.msra.gmra.mrb[4].mxu0 %vm223_vm4, %v199_v29 }
 0x2aa   :  { %v261_v31 = vpop.f32.mrb[4].mxu0 }
 0x2ab   :  { %v262_v32 = vadd.f32 %v295_v30, %v261_v31  ;;  %v342_v33 = vpop.f32.mrb[5].mxu0 }
 0x2ac   :  { %v264_v34 = vpop.f32.mrb[6].mxu0 }
 0x2ad   :  { %v343_v35 = vpop.f32.mrb[7].mxu0  ;;  %268 = vst.msk [vmem:[#allocation2] sm:$0xff] %vm267_vm5, %v262_v32 }
 0x2ae   :  { %372 = shalt.err (!%p369_p4)
}
 0x2af   :  { %s373_s6 = scalar_lea.hbm %s492_s7, 128 }
 0x2b0   :  { %p374_p5 = scmp.ne.s32.totalorder %s492_s7, %s373_s6  ;;  %p377_p6 = scmp.lt.u32.totalorder %s373_s6, %s492_s7 }
 0x2b2   :  { %p379_p7 = pnand %p377_p6, %p374_p5 }
 0x2b4   :  { %382 = shalt.err (!%p379_p7)
}
 0x2b5   :  { %278 = dma.vmem_to_hbm [thread:$0]  %s276_s25, 128, %s492_s7, [#allocation3]  }
 0x2b6   :  { %383 = dma.done.wait [#allocation3], 128  }
 0x2b7   :  { %384 = vsyncadd [#allocation3], 4294967168 }
 0x2b8   :  { %282 = vsyncpa [#allocation3], 1 }

</bundles_post_ra>
